<compile_context>
chip_gen: v6e
topology: v6e:2x2x1
jax: 0.10.0
libtpu: 0.0.40
codegen_flags: <defaults>
</compile_context>

<pallas_src>
import functools
import math

import jax
import jax.numpy as jnp
from jax.experimental import pallas as pl
from jax.experimental.pallas import tpu as pltpu


def _fast_recip(x):
    """Approx reciprocal on the EUP + one Newton step (≈ full f32 accuracy)."""
    r = pl.reciprocal(x, approx=True)
    return r * (2.0 - x * r)


def _ea_kernel(x_ref, wqkv_ref, bqkv_ref, wr_ref, br_ref, mqq_ref, mctx_ref, o_ref,
               *, b_tile, in_channels, key_channels, value_channels):
    bt, c, kc, vc = b_tile, in_channels, key_channels, value_channels
    nk = bt * kc
    nv = bt * vc

    x = x_ref[...]                                        # (bt*C, HW), dense
    hw = x.shape[1]

    # Fused QKV 1x1 convs for the whole tile: one block-diagonal matmul.
    qkv = jnp.dot(wqkv_ref[...].astype(x.dtype), x,
                  preferred_element_type=jnp.float32) + bqkv_ref[...]
    keys = qkv[:nk, :]                                    # element b -> rows [b*kc,(b+1)*kc)
    queries = qkv[nk:2 * nk, :]
    values = qkv[2 * nk:2 * nk + nv, :]                   # element b -> rows [b*vc,(b+1)*vc)

    # Keys: softmax over spatial; normalisation folded into the tiny context below.
    k_e = jnp.exp(keys - jnp.max(keys, axis=1, keepdims=True))
    k_inv = _fast_recip(jnp.sum(k_e, axis=1, keepdims=True))      # (nk,1), sum >= 1

    # Queries: per-head softmax over channels.  Stabilise with the per-element
    # per-column max (free view: kc == 8 sublanes); per-(element,head) denominators
    # come from one block-diagonal mask matmul.  Clamp so an underflowed head
    # produces 0 instead of inf/NaN through the approximate reciprocal.
    q3 = queries.reshape(bt, kc, hw)
    q_e = jnp.exp(q3 - jnp.max(q3, axis=1, keepdims=True)).reshape(nk, hw)
    q_den = jnp.dot(mqq_ref[...], q_e, preferred_element_type=jnp.float32)
    q_den = jnp.maximum(q_den, 1e-30)
    q_sm = q_e * _fast_recip(q_den)

    # Context for all elements/heads in one matmul (contract over spatial), masked
    # to the per-element per-head block diagonal; key normalisation is a row scale.
    ctx = jax.lax.dot_general(k_e, values, (((1,), (1,)), ((), ())),
                              preferred_element_type=jnp.float32)   # (nk, nv)
    ctx = ctx * k_inv * mctx_ref[...]

    # Reprojection folded in via associativity: (Wr_bd @ ctx^T) @ q_sm, + bias + residual.
    w2 = jax.lax.dot_general(wr_ref[...], ctx, (((1,), (1,)), ((), ())),
                             preferred_element_type=jnp.float32)    # (bt*C, nk)
    out = jnp.dot(w2, q_sm, preferred_element_type=jnp.float32)
    out = out + br_ref[...] + x.astype(jnp.float32)
    o_ref[...] = out.astype(o_ref.dtype)                            # dense, unmasked store


def _vmem_bytes(bt, c, hw, kc, vc, io_bytes):
    """Rough pipelined working-set estimate (double-buffered blocks + f32 temps)."""
    q = 2 * kc + vc
    blocks = 2 * 2 * bt * c * hw * io_bytes                 # in + out, double-buffered
    temps = (bt * q + 4 * bt * kc + 2 * bt * c) * hw * 4    # qkv, k_e, q_e/q_den/q_sm, out
    consts = (bt * q * bt * c + 2 * (bt * kc) ** 2 + 2 * (bt * c) * (bt * vc)) * 4
    return blocks + temps + consts


def efficient_attention(x_nchw, params, *, head_count, b_tile=8, io_dtype=None,
                        vmem_budget_bytes=24 << 20):
    """x_nchw: (N, C, H, W); params: 1x1-conv weights (out,in) and biases (out,1)."""
    n, c, h, w = x_nchw.shape
    hw = h * w

    wk, bk = params["wk"], params["bk"]
    wq, bq = params["wq"], params["bq"]
    wv, bv = params["wv"], params["bv"]
    wr, br = params["wr"], params["br"]
    kc = wk.shape[0]
    vc = wv.shape[0]
    hkc = kc // head_count
    hvc = vc // head_count

    io_bytes = jnp.dtype(io_dtype if io_dtype is not None else x_nchw.dtype).itemsize

    # Tile size: bt*C must be a multiple of 8 for dense blocks; fit the VMEM budget
    # (v7x-safe default); prefer >= 2 grid steps so v7x's two TensorCores get work.
    m_unit = 8 // math.gcd(c, 8)
    bt = max(1, min(b_tile, n))
    bt = max(m_unit, (bt // m_unit) * m_unit)
    while bt > m_unit and _vmem_bytes(bt, c, hw, kc, vc, io_bytes) > vmem_budget_bytes:
        bt -= m_unit
    while bt > m_unit and pl.cdiv(n, bt) < 2:
        bt -= m_unit

    # Block-diagonal weights / biases / same-(element,head) masks, built host-side.
    eye = jnp.eye(bt, dtype=jnp.float32)
    head_k = jnp.arange(kc) // hkc
    head_v = jnp.arange(vc) // hvc
    mask_kk = (head_k[:, None] == head_k[None, :]).astype(jnp.float32)   # (kc,kc)
    mask_kv = (head_k[:, None] == head_v[None, :]).astype(jnp.float32)   # (kc,vc)
    mqq = jnp.kron(eye, mask_kk)                                         # (bt*kc, bt*kc)
    mctx = jnp.kron(eye, mask_kv)                                        # (bt*kc, bt*vc)
    wqkv_bd = jnp.concatenate(
        [jnp.kron(eye, wk), jnp.kron(eye, wq), jnp.kron(eye, wv)], axis=0)
    bqkv_bd = jnp.concatenate(
        [jnp.tile(bk, (bt, 1)), jnp.tile(bq, (bt, 1)), jnp.tile(bv, (bt, 1))], axis=0)
    wr_bd = jnp.kron(eye, wr)                                            # (bt*C, bt*vc)
    br_bd = jnp.tile(br, (bt, 1))                                        # (bt*C, 1)

    # Sublane-dense HBM layout: (N, C, HW) -> (N*C, HW) is a free reshape.
    x = x_nchw.reshape(n, c, hw)
    if io_dtype is not None:
        x = x.astype(io_dtype)
    n_pad = pl.cdiv(n, bt) * bt
    if n_pad != n:
        x = jnp.pad(x, ((0, n_pad - n), (0, 0), (0, 0)))
    x2d = x.reshape(n_pad * c, hw)

    est = _vmem_bytes(bt, c, hw, kc, vc, io_bytes)
    vmem_limit = int(min(max(2 * est, 16 << 20), 100 << 20))

    kernel = functools.partial(_ea_kernel, b_tile=bt, in_channels=c,
                               key_channels=kc, value_channels=vc)
    full = lambda a: pl.BlockSpec(a.shape, lambda i: (0,) * a.ndim)

    out2d = pl.pallas_call(
        kernel,
        out_shape=jax.ShapeDtypeStruct((n_pad * c, hw), x2d.dtype),
        grid_spec=pltpu.PrefetchScalarGridSpec(
            num_scalar_prefetch=0,
            grid=(n_pad // bt,),
            in_specs=[
                pl.BlockSpec((bt * c, hw), lambda i: (i, 0)),
                full(wqkv_bd), full(bqkv_bd), full(wr_bd), full(br_bd),
                full(mqq), full(mctx),
            ],
            out_specs=pl.BlockSpec((bt * c, hw), lambda i: (i, 0)),
        ),
        compiler_params=pltpu.CompilerParams(
            dimension_semantics=("parallel",),       # batch tiles are independent
            vmem_limit_bytes=vmem_limit),
    )(x2d, wqkv_bd, bqkv_bd, wr_bd, br_bd, mqq, mctx)

    out = out2d.reshape(n_pad, c, hw)[:n].reshape(n, c, h, w)
    return out.astype(x_nchw.dtype)


def efficient_attention_ref(x_nchw, params, *, head_count):
    """Pure-JAX reference mirroring the PyTorch forward."""
    n, c, h, w = x_nchw.shape
    hw = h * w
    x = x_nchw.reshape(n, c, hw)
    kc = params["wk"].shape[0]
    vc = params["wv"].shape[0]
    keys = jnp.einsum("oc,ncs->nos", params["wk"], x) + params["bk"][None]
    queries = jnp.einsum("oc,ncs->nos", params["wq"], x) + params["bq"][None]
    values = jnp.einsum("oc,ncs->nos", params["wv"], x) + params["bv"][None]
    hkc = kc // head_count
    hvc = vc // head_count
    att = []
    for i in range(head_count):
        k = jax.nn.softmax(keys[:, i * hkc:(i + 1) * hkc, :], axis=2)
        q = jax.nn.softmax(queries[:, i * hkc:(i + 1) * hkc, :], axis=1)
        v = values[:, i * hvc:(i + 1) * hvc, :]
        ctx = jnp.einsum("nks,nvs->nkv", k, v)
        att.append(jnp.einsum("nkv,nks->nvs", ctx, q))
    agg = jnp.concatenate(att, axis=1)
    reproj = jnp.einsum("oc,ncs->nos", params["wr"], agg) + params["br"][None]
    return (reproj + x).reshape(n, c, h, w)


if __name__ == "__main__":
    # Module config: in_channels=4, key_channels=8, head_count=2, value_channels=8
    N, C, H, W = 2, 4, 16, 16
    KEY_CH, HEAD_COUNT, VAL_CH = 8, 2, 8

    root = jax.random.PRNGKey(0)
    ks = jax.random.split(root, 9)
    x = jax.random.normal(ks[0], (N, C, H, W), jnp.float32)

    params = {
        "wk": 0.2 * jax.random.normal(ks[1], (KEY_CH, C), jnp.float32),
        "bk": 0.1 * jax.random.normal(ks[2], (KEY_CH, 1), jnp.float32),
        "wq": 0.2 * jax.random.normal(ks[3], (KEY_CH, C), jnp.float32),
        "bq": 0.1 * jax.random.normal(ks[4], (KEY_CH, 1), jnp.float32),
        "wv": 0.2 * jax.random.normal(ks[5], (VAL_CH, C), jnp.float32),
        "bv": 0.1 * jax.random.normal(ks[6], (VAL_CH, 1), jnp.float32),
        "wr": 0.2 * jax.random.normal(ks[7], (C, VAL_CH), jnp.float32),
        "br": 0.1 * jax.random.normal(ks[8], (C, 1), jnp.float32),
    }

    out = efficient_attention(x, params, head_count=HEAD_COUNT)
    jax.block_until_ready(out)

    ref = efficient_attention_ref(x, params, head_count=HEAD_COUNT)
    assert out.shape == (N, C, H, W)
    assert jnp.allclose(out, ref, atol=1e-4, rtol=1e-4), "mismatch vs reference"
    print("KERNEL_OK")
</pallas_src>

<mosaic_0001>
module attributes {stable_mosaic.version = 11 : i64} {
  func.func @_ea_kernel(%arg0: i32, %arg1: memref<8x256xf32, #tpu.memory_space<vmem>>, %arg2: memref<48x8xf32, #tpu.memory_space<vmem>>, %arg3: memref<48x1xf32, #tpu.memory_space<vmem>>, %arg4: memref<8x16xf32, #tpu.memory_space<vmem>>, %arg5: memref<8x1xf32, #tpu.memory_space<vmem>>, %arg6: memref<16x16xf32, #tpu.memory_space<vmem>>, %arg7: memref<16x16xf32, #tpu.memory_space<vmem>>, %arg8: memref<8x256xf32, #tpu.memory_space<vmem>>) attributes {dimension_semantics = [#tpu.dimension_semantics<parallel>], iteration_bounds = array<i64: 1>, scalar_prefetch = 0 : i64, scratch_operands = 0 : i64, tpu.core_type = #tpu.core_type<tc>, window_params = [{transform_indices = @transform_0, window_bounds = array<i64: 8, 256>}, {pipeline_mode = #tpu.pipeline_mode<synchronous>, transform_indices = @transform_1, window_bounds = array<i64: 48, 8>}, {pipeline_mode = #tpu.pipeline_mode<synchronous>, transform_indices = @transform_2, window_bounds = array<i64: 48, 1>}, {pipeline_mode = #tpu.pipeline_mode<synchronous>, transform_indices = @transform_3, window_bounds = array<i64: 8, 16>}, {pipeline_mode = #tpu.pipeline_mode<synchronous>, transform_indices = @transform_4, window_bounds = array<i64: 8, 1>}, {pipeline_mode = #tpu.pipeline_mode<synchronous>, transform_indices = @transform_5, window_bounds = array<i64: 16, 16>}, {pipeline_mode = #tpu.pipeline_mode<synchronous>, transform_indices = @transform_6, window_bounds = array<i64: 16, 16>}, {transform_indices = @transform_7, window_bounds = array<i64: 8, 256>}]} {
    %c0 = arith.constant 0 : index
    %c0_0 = arith.constant 0 : index
    %0 = vector.load %arg1[%c0, %c0_0] : memref<8x256xf32, #tpu.memory_space<vmem>>, vector<8x256xf32>
    %c0_1 = arith.constant 0 : index
    %c0_2 = arith.constant 0 : index
    %1 = vector.load %arg2[%c0_1, %c0_2] : memref<48x8xf32, #tpu.memory_space<vmem>>, vector<48x8xf32>
    %cst = arith.constant dense<0.000000e+00> : vector<48x256xf32>
    %2 = tpu.matmul %1, %0, %cst {dimension_numbers = #tpu.dot_dimension_numbers<[1], [0], [0], [1], [0, 0, 1, 1], [], []>} : vector<48x8xf32>, vector<8x256xf32>, vector<48x256xf32> -> vector<48x256xf32>
    %c0_3 = arith.constant 0 : index
    %c0_4 = arith.constant 0 : index
    %3 = vector.load %arg3[%c0_3, %c0_4] : memref<48x1xf32, #tpu.memory_space<vmem>>, vector<48x1xf32>
    %4 = vector.broadcast %3 : vector<48x1xf32> to vector<48x256xf32>
    %5 = arith.addf %2, %4 : vector<48x256xf32>
    %6 = vector.extract_strided_slice %5 {offsets = [0, 0], sizes = [16, 256], strides = [1, 1]} : vector<48x256xf32> to vector<16x256xf32>
    %7 = vector.extract_strided_slice %5 {offsets = [16, 0], sizes = [16, 256], strides = [1, 1]} : vector<48x256xf32> to vector<16x256xf32>
    %8 = vector.extract_strided_slice %5 {offsets = [32, 0], sizes = [16, 256], strides = [1, 1]} : vector<48x256xf32> to vector<16x256xf32>
    %cst_5 = arith.constant dense<0xFF800000> : vector<16xf32>
    %9 = vector.multi_reduction <maximumf>, %6, %cst_5 [1] : vector<16x256xf32> to vector<16xf32>
    %10 = vector.shape_cast %9 : vector<16xf32> to vector<16x1xf32>
    %11 = vector.broadcast %10 : vector<16x1xf32> to vector<16x256xf32>
    %12 = arith.subf %6, %11 : vector<16x256xf32>
    %13 = math.exp %12 : vector<16x256xf32>
    %cst_6 = arith.constant dense<0.000000e+00> : vector<16xf32>
    %14 = vector.multi_reduction <add>, %13, %cst_6 [1] : vector<16x256xf32> to vector<16xf32>
    %15 = vector.shape_cast %14 : vector<16xf32> to vector<16x1xf32>
    %16 = tpu.reciprocal %15 {approx = true} : vector<16x1xf32> -> vector<16x1xf32>
    %17 = arith.mulf %15, %16 : vector<16x1xf32>
    %cst_7 = arith.constant 2.000000e+00 : f32
    %18 = vector.broadcast %cst_7 : f32 to vector<16x1xf32>
    %19 = arith.subf %18, %17 : vector<16x1xf32>
    %20 = arith.mulf %16, %19 : vector<16x1xf32>
    %21 = vector.shape_cast %7 : vector<16x256xf32> to vector<2x8x256xf32>
    %cst_8 = arith.constant dense<0xFF800000> : vector<2x256xf32>
    %22 = vector.multi_reduction <maximumf>, %21, %cst_8 [1] : vector<2x8x256xf32> to vector<2x256xf32>
    %23 = vector.shape_cast %22 : vector<2x256xf32> to vector<2x1x256xf32>
    %24 = vector.broadcast %23 : vector<2x1x256xf32> to vector<2x8x256xf32>
    %25 = arith.subf %21, %24 : vector<2x8x256xf32>
    %26 = math.exp %25 : vector<2x8x256xf32>
    %27 = vector.shape_cast %26 : vector<2x8x256xf32> to vector<16x256xf32>
    %c0_9 = arith.constant 0 : index
    %c0_10 = arith.constant 0 : index
    %28 = vector.load %arg6[%c0_9, %c0_10] : memref<16x16xf32, #tpu.memory_space<vmem>>, vector<16x16xf32>
    %cst_11 = arith.constant dense<0.000000e+00> : vector<16x256xf32>
    %29 = tpu.matmul %28, %27, %cst_11 {dimension_numbers = #tpu.dot_dimension_numbers<[1], [0], [0], [1], [0, 0, 1, 1], [], []>} : vector<16x16xf32>, vector<16x256xf32>, vector<16x256xf32> -> vector<16x256xf32>
    %cst_12 = arith.constant 1.000000e-30 : f32
    %30 = vector.broadcast %cst_12 : f32 to vector<16x256xf32>
    %31 = arith.maximumf %29, %30 : vector<16x256xf32>
    %32 = tpu.reciprocal %31 {approx = true} : vector<16x256xf32> -> vector<16x256xf32>
    %33 = arith.mulf %31, %32 : vector<16x256xf32>
    %cst_13 = arith.constant 2.000000e+00 : f32
    %34 = vector.broadcast %cst_13 : f32 to vector<16x256xf32>
    %35 = arith.subf %34, %33 : vector<16x256xf32>
    %36 = arith.mulf %32, %35 : vector<16x256xf32>
    %37 = arith.mulf %27, %36 : vector<16x256xf32>
    %cst_14 = arith.constant dense<0.000000e+00> : vector<16x16xf32>
    %38 = tpu.matmul %13, %8, %cst_14 {dimension_numbers = #tpu.dot_dimension_numbers<[1], [1], [0], [0], [0, 0, 1, 0], [], []>} : vector<16x256xf32>, vector<16x256xf32>, vector<16x16xf32> -> vector<16x16xf32>
    %39 = vector.broadcast %20 : vector<16x1xf32> to vector<16x16xf32>
    %40 = arith.mulf %38, %39 : vector<16x16xf32>
    %c0_15 = arith.constant 0 : index
    %c0_16 = arith.constant 0 : index
    %41 = vector.load %arg7[%c0_15, %c0_16] : memref<16x16xf32, #tpu.memory_space<vmem>>, vector<16x16xf32>
    %42 = arith.mulf %40, %41 : vector<16x16xf32>
    %c0_17 = arith.constant 0 : index
    %c0_18 = arith.constant 0 : index
    %43 = vector.load %arg4[%c0_17, %c0_18] : memref<8x16xf32, #tpu.memory_space<vmem>>, vector<8x16xf32>
    %cst_19 = arith.constant dense<0.000000e+00> : vector<8x16xf32>
    %44 = tpu.matmul %43, %42, %cst_19 {dimension_numbers = #tpu.dot_dimension_numbers<[1], [1], [0], [0], [0, 0, 1, 0], [], []>} : vector<8x16xf32>, vector<16x16xf32>, vector<8x16xf32> -> vector<8x16xf32>
    %cst_20 = arith.constant dense<0.000000e+00> : vector<8x256xf32>
    %45 = tpu.matmul %44, %37, %cst_20 {dimension_numbers = #tpu.dot_dimension_numbers<[1], [0], [0], [1], [0, 0, 1, 1], [], []>} : vector<8x16xf32>, vector<16x256xf32>, vector<8x256xf32> -> vector<8x256xf32>
    %c0_21 = arith.constant 0 : index
    %c0_22 = arith.constant 0 : index
    %46 = vector.load %arg5[%c0_21, %c0_22] : memref<8x1xf32, #tpu.memory_space<vmem>>, vector<8x1xf32>
    %47 = vector.broadcast %46 : vector<8x1xf32> to vector<8x256xf32>
    %48 = arith.addf %45, %47 : vector<8x256xf32>
    %49 = arith.addf %48, %0 : vector<8x256xf32>
    %c0_23 = arith.constant 0 : index
    %c0_24 = arith.constant 0 : index
    %50 = vector.load %arg8[%c0_23, %c0_24] : memref<8x256xf32, #tpu.memory_space<vmem>>, vector<8x256xf32>
    tpu.vector_store %arg8[%c0_23, %c0_24], %49 {strides = array<i32>} : memref<8x256xf32, #tpu.memory_space<vmem>>, vector<8x256xf32>,
    return
  }
  func.func @transform_0(%arg0: i32) -> (i32, i32) {
    %c0_i32 = arith.constant 0 : i32
    %c0_i32_0 = arith.constant 0 : i32
    return %arg0, %c0_i32 : i32, i32
  }
  func.func @transform_1(%arg0: i32) -> (i32, i32) {
    %c0_i32 = arith.constant 0 : i32
    %c0_i32_0 = arith.constant 0 : i32
    %c0_i32_1 = arith.constant 0 : i32
    return %c0_i32, %c0_i32_0 : i32, i32
  }
  func.func @transform_2(%arg0: i32) -> (i32, i32) {
    %c0_i32 = arith.constant 0 : i32
    %c0_i32_0 = arith.constant 0 : i32
    %c0_i32_1 = arith.constant 0 : i32
    return %c0_i32, %c0_i32_0 : i32, i32
  }
  func.func @transform_3(%arg0: i32) -> (i32, i32) {
    %c0_i32 = arith.constant 0 : i32
    %c0_i32_0 = arith.constant 0 : i32
    %c0_i32_1 = arith.constant 0 : i32
    return %c0_i32, %c0_i32_0 : i32, i32
  }
  func.func @transform_4(%arg0: i32) -> (i32, i32) {
    %c0_i32 = arith.constant 0 : i32
    %c0_i32_0 = arith.constant 0 : i32
    %c0_i32_1 = arith.constant 0 : i32
    return %c0_i32, %c0_i32_0 : i32, i32
  }
  func.func @transform_5(%arg0: i32) -> (i32, i32) {
    %c0_i32 = arith.constant 0 : i32
    %c0_i32_0 = arith.constant 0 : i32
    %c0_i32_1 = arith.constant 0 : i32
    return %c0_i32, %c0_i32_0 : i32, i32
  }
  func.func @transform_6(%arg0: i32) -> (i32, i32) {
    %c0_i32 = arith.constant 0 : i32
    %c0_i32_0 = arith.constant 0 : i32
    %c0_i32_1 = arith.constant 0 : i32
    return %c0_i32, %c0_i32_0 : i32, i32
  }
  func.func @transform_7(%arg0: i32) -> (i32, i32) {
    %c0_i32 = arith.constant 0 : i32
    %c0_i32_0 = arith.constant 0 : i32
    return %arg0, %c0_i32 : i32, i32
  }
}

</mosaic_0001>

<bundles_post_ra>
// kernel: tpu_custom_call.1
= control target key start
LH: loop header
LB: loop body
LE: loop exit
PB: predicated region body
PF: predicated region fallthrough
CT: control target
= control target key end

     0   :  { %vm71_vm0 = vcmask 64512   ;;  %v706_v3 = vmov 0.0   ;;  %v707_v4 = vmov 0   ;;  %s877_s0 = inlined_call_operand.vmem [shape: f32[8,256], index: 0, kind: input, shape index: {}]   ;;  %s878_s1 = inlined_call_operand.vmem [shape: f32[48,8], index: 1, kind: input, shape index: {}]   ;;  %s879_s2 = inlined_call_operand.vmem [shape: f32[48,1], index: 2, kind: input, shape index: {}]   ;;  %s880_s3 = inlined_call_operand.vmem [shape: f32[8,16], index: 3, kind: input, shape index: {}]   ;;  %s881_s4 = inlined_call_operand.vmem [shape: f32[8,1], index: 4, kind: input, shape index: {}]   ;;  %s882_s5 = inlined_call_operand.vmem [shape: f32[16,16], index: 5, kind: input, shape index: {}]   ;;  %s883_s6 = inlined_call_operand.vmem [shape: f32[16,16], index: 6, kind: input, shape index: {}]   ;;  %s884_s7 = inlined_call_operand.hbm [shape: f32[8,256], index: 7, kind: output, shape index: {}]  }
   0x1   :  { %v753_v0 = vld [vmem:[%s877_s0 + $0x8] sm:$0xff]  ;;  %v758_v1 = vld [vmem:[%s877_s0] sm:$0xff]  ;;  %154 = vmatprep.mubr.f32.mxu0 %v706_v3  ;;  %654 = vset.pattern.permute.xlu0 %v707_v4  ;;  %v38_v6 = vld [vmem:[%s879_s2 + $0x18] sm:$0xff] }
   0x2   :  { %v29_v2 = vld [vmem:[%s878_s1] sm:$0xff]  ;;  %120 = vmatprep.subr.mxu0 %v753_v0  ;;  %v30_v7 = vld [vmem:[%s878_s1 + $0x8] sm:$0xff]  ;;  %655 = vset.pattern.permute.xlu1 %v707_v4 }
   0x3   :  { %121 = vmatpush1.msra.mxu0 %v758_v1  ;;  %v35_v5 = vld [vmem:[%s879_s2] sm:$0xff]  ;;  %v36_v8 = vld [vmem:[%s879_s2 + $0x8] sm:$0xff] }
   0x4   :  { %628 = vmatmul.mubr.msk.f32.vlgmr.msra.gmra.mxu0 %vm71_vm0, %v29_v2  ;;  %43 = vperm.xlu0 %654, %v35_v5  }
   0x5   :  { %160 = vmatprep.mubr.f32.mxu0 %v706_v3 }
   0x6   :  { %12 = vsyncpa [#allocation3], 0  ;;  %58 = vperm.xlu1 %655, %v38_v6   ;;  %332 = vmatprep.mubr.f32.mxu1 %v706_v3  ;;  %v37_v9 = vld [vmem:[%s879_s2 + $0x10] sm:$0xff]  ;;  %v32_v11 = vld [vmem:[%s878_s1 + $0x18] sm:$0xff]  ;;  %vm261_vm1 = vcmask 130048   ;;  %vm708_vm2 = vmmov 0  }
   0x7   :  { %v31_v10 = vld [vmem:[%s878_s1 + $0x10] sm:$0xff]  ;;  %v33_v12 = vld [vmem:[%s878_s1 + $0x20] sm:$0xff]  ;;  %v34_v13 = vld [vmem:[%s878_s1 + $0x28] sm:$0xff] }
   0x8   :  { %629 = vmatmul.mubr.msk.f32.gmra.mxu0 %vm71_vm0, %v30_v7  ;;  %48 = vperm.xlu0 %654, %v36_v8   ;;  %v39_v60 = vld [vmem:[%s879_s2 + $0x20] sm:$0xff]  ;;  %v40_v62 = vld [vmem:[%s879_s2 + $0x28] sm:$0xff] }
   0x9   :  { %166 = vmatprep.mubr.f32.mxu0 %v706_v3 }
   0xa   :  { %53 = vperm.xlu1 %655, %v37_v9  }
   0xc   :  { %630 = vmatmul.mubr.msk.f32.gmra.mxu0 %vm71_vm0, %v31_v10 }
   0xd   :  { %172 = vmatprep.mubr.f32.mxu0 %v706_v3 }
  0x10   :  { %631 = vmatmul.mubr.msk.f32.gmra.mxu0 %vm71_vm0, %v32_v11 }
  0x11   :  { %178 = vmatprep.mubr.f32.mxu0 %v706_v3 }
  0x14   :  { %632 = vmatmul.mubr.msk.f32.gmra.mxu0 %vm71_vm0, %v33_v12 }
  0x15   :  { %184 = vmatprep.mubr.f32.mxu0 %v706_v3 }
  0x18   :  { %633 = vmatmul.mubr.msk.f32.gmra.mxu0 %vm71_vm0, %v34_v13  ;;  %v259_v13 = vld [vmem:[%s882_s5] sm:$0xff] }
  0x7f   :  { %v44_v14 = vpop.permute.xlu0 %43 }
  0x81   :  { %v59_v16 = vpop.permute.xlu1 %58 }
  0x83   :  { %v49_v21 = vpop.permute.xlu0 %48 }
  0x85   :  { %v54_v24 = vpop.permute.xlu1 %53 }
  0xc4   :  { %v156_v15 = vpop.f32.mrf.mxu0 }
  0xc5   :  { %v805_v18 = vadd.f32 %v156_v15, %v44_v14 }
  0xc6   :  { %v158_v17 = vpop.f32.mrf.mxu0 }
  0xc7   :  { %v807_v19 = vadd.f32 %v158_v17, %v44_v14  ;;  %v260_v14 = vld [vmem:[%s882_s5 + $0x8] sm:$0xff] }
  0xc8   :  { %v162_v20 = vpop.f32.mrf.mxu0 }
  0xc9   :  { %v191_v22 = vmax.f32 %v805_v18, %v807_v19  ;;  %v811_v25 = vadd.f32 %v162_v20, %v49_v21 }
  0xca   :  { %v164_v23 = vpop.f32.mrf.mxu0 }
  0xcb   :  { %v813_v26 = vadd.f32 %v164_v23, %v49_v21  ;;  %192 = vmax.xlane.f32.xlu0 %v191_v22 }
  0xcc   :  { %v168_v27 = vpop.f32.mrf.mxu0 }
  0xcd   :  { %v194_v28 = vmax.f32 %v811_v25, %v813_v26  ;;  %v169_v29 = vadd.f32 %v168_v27, %v54_v24 }
  0xce   :  { %v170_v30 = vpop.f32.mrf.mxu0 }
  0xcf   :  { %195 = vmax.xlane.f32.xlu1 %v194_v28  ;;  %v171_v31 = vadd.f32 %v170_v30, %v54_v24  ;;  %v223_v32 = vrot.slane %v169_v29, 4 }
  0xd0   :  { %v174_v33 = vpop.f32.mrf.mxu0 }
  0xd1   :  { %v175_v34 = vadd.f32 %v174_v33, %v59_v16  ;;  %v224_v35 = vmax.f32 %v169_v29, %v223_v32  ;;  %v229_v36 = vrot.slane %v171_v31, 4 }
  0xd2   :  { %v176_v37 = vpop.f32.mrf.mxu0 }
  0xd3   :  { %v235_v38 = vrot.slane %v175_v34, 4  ;;  %v177_v39 = vadd.f32 %v176_v37, %v59_v16  ;;  %v225_v40 = vrot.slane %v224_v35, 2  ;;  %v230_v41 = vmax.f32 %v171_v31, %v229_v36 }
  0xd4   :  { %v180_v15 = vpop.f32.mrf.mxu0 }
  0xd5   :  { %v236_v42 = vmax.f32 %v175_v34, %v235_v38  ;;  %v241_v43 = vrot.slane %v177_v39, 4  ;;  %v226_v44 = vmax.f32 %v224_v35, %v225_v40  ;;  %v231_v45 = vrot.slane %v230_v41, 2 }
  0xd6   :  { %v182_v16 = vpop.f32.mrf.mxu0 }
  0xd7   :  { %v237_v46 = vrot.slane %v236_v42, 2  ;;  %v242_v47 = vmax.f32 %v177_v39, %v241_v43  ;;  %v227_v48 = vrot.slane %v226_v44, 1  ;;  %v232_v49 = vmax.f32 %v230_v41, %v231_v45  ;;  %v530_v41 = vld [vmem:[%s881_s4] sm:$0xff] }
  0xd8   :  { %v186_v24 = vpop.f32.mrf.mxu0 }
  0xd9   :  { %v238_v50 = vmax.f32 %v236_v42, %v237_v46  ;;  %v243_v51 = vrot.slane %v242_v47, 2  ;;  %v233_v52 = vrot.slane %v232_v49, 1  ;;  %v228_v53 = vmax.f32 %v226_v44, %v227_v48 }
  0xda   :  { %v188_v32 = vpop.f32.mrf.mxu0 }
  0xdb   :  { %v239_v54 = vrot.slane %v238_v50, 1  ;;  %v244_v55 = vmax.f32 %v242_v47, %v243_v51  ;;  %v234_v56 = vmax.f32 %v232_v49, %v233_v52  ;;  %v247_v61 = vsub.f32 %v169_v29, %v228_v53 }
  0xdd   :  { %v240_v57 = vmax.f32 %v238_v50, %v239_v54  ;;  %v245_v58 = vrot.slane %v244_v55, 1  ;;  %v248_v59 = vsub.f32 %v171_v31, %v234_v56  ;;  %v251_v7 = vmul.f32 1.442695, %v247_v61 }
  0xdf   :  { %v249_v63 = vsub.f32 %v175_v34, %v240_v57  ;;  %v246_v2 = vmax.f32 %v244_v55, %v245_v58  ;;  %v253_v4 = vmul.f32 1.442695, %v248_v59 }
  0xe0   :  { %63 = vperm.xlu1 %655, %v39_v60  }
  0xe1   :  { %v255_v5 = vmul.f32 1.442695, %v249_v63  ;;  %v250_v6 = vsub.f32 %v177_v39, %v246_v2  ;;  %68 = vperm.xlu0 %654, %v40_v62   ;;  %656 = vpow2.f32 %v253_v4 }
  0xe3   :  { %v257_v8 = vmul.f32 1.442695, %v250_v6  ;;  %658 = vpow2.f32 %v255_v5 }
  0xe5   :  { %660 = vpow2.f32 %v257_v8 }
  0xe6   :  { %662 = vpow2.f32 %v251_v7 }
  0xee   :  { %v823_v9 = vpop.eup %656 }
  0xf0   :  { %v825_v10 = vpop.eup %658 }
  0xf2   :  { %v827_v11 = vpop.eup %660 }
  0xf3   :  { %v829_v12 = vpop.eup %662  ;;  %296 = vmatprep.subr.mxu1 %v827_v11 }
  0xf4   :  { %297 = vmatpush1.msra.mxu1 %v825_v10 }
  0xf5   :  { %298 = vmatprep.subr.mxu1 %v823_v9 }
  0xf6   :  { %299 = vmatpush1.msra.mxu1 %v829_v12 }
  0xf7   :  { %634 = vmatmul.mubr.msk.f32.vlgmr.msra.gmra.mxu1 %vm261_vm1, %v259_v13  ;;  %v447_v13 = vld [vmem:[%s883_s6 + $0x8] sm:$0xff] }
  0xf8   :  { %338 = vmatprep.mubr.f32.mxu1 %v706_v3 }
  0xfb   :  { %635 = vmatmul.mubr.msk.f32.gmra.mxu1 %vm261_vm1, %v260_v14 }
 0x154   :  { %v193_v17 = vpop.xlane.xlu0 %192 }
 0x155   :  { %v197_v20 = vsub.f32 %v805_v18, %v193_v17  ;;  %v198_v21 = vsub.f32 %v807_v19, %v193_v17 }
 0x157   :  { %v201_v22 = vmul.f32 1.442695, %v197_v20  ;;  %v203_v23 = vmul.f32 1.442695, %v198_v21 }
 0x158   :  { %v196_v27 = vpop.xlane.xlu1 %195 }
 0x159   :  { %664 = vpow2.f32 %v201_v22  ;;  %v199_v28 = vsub.f32 %v811_v25, %v196_v27  ;;  %v200_v29 = vsub.f32 %v813_v26, %v196_v27  ;;  %v446_v27 = vld [vmem:[%s883_s6] sm:$0xff] }
 0x15a   :  { %666 = vpow2.f32 %v203_v23 }
 0x15b   :  { %v205_v30 = vmul.f32 1.442695, %v199_v28  ;;  %v207_v31 = vmul.f32 1.442695, %v200_v29 }
 0x15c   :  { %v69_v33 = vpop.permute.xlu0 %68  ;;  %v64_v34 = vpop.permute.xlu1 %63 }
 0x15d   :  { %668 = vpow2.f32 %v205_v30  ;;  %v187_v35 = vadd.f32 %v186_v24, %v69_v33  ;;  %v189_v18 = vadd.f32 %v188_v32, %v69_v33  ;;  %v183_v19 = vadd.f32 %v182_v16, %v64_v34 }
 0x15e   :  { %670 = vpow2.f32 %v207_v31  ;;  %v181_v36 = vadd.f32 %v180_v15, %v64_v34  ;;  %v450_v34 = vld [vmem:[%s880_s3] sm:$0xff]  ;;  %s709_s3 = smov [#allocation2]  }
 0x15f   :  { %397 = vmatprep.subr.mxu1 %v189_v18  ;;  %s620_s6 = sshll.u32 %s709_s3, 4  ;;  %s621_s6 = int_to_ptr.vmem [resolvable:$true] %s620_s6 }
 0x160   :  { %398 = vmatpush1.xpose.msra.mxu1 %v187_v35  ;;  %s684_s12 = scalar_lea.vmem %s621_s6, 256  ;;  %p689_p1 = scmp.lt.s32.totalorder %s621_s6, %s621_s6 }
 0x161   :  { %399 = vmatprep.subr.mxu1 %v183_v19  ;;  %p685_p0 = scmp.ne.s32.totalorder %s621_s6, %s684_s12  ;;  %p690_p2 = scmp.lt.s32.totalorder %s684_s12, %s684_s12 }
 0x163   :  { %p691_p3 = por %p690_p2, %p689_p1 }
 0x164   :  { %400 = vmatpush1.xpose.msra.mxu1 %v181_v36 }
 0x165   :  { %643 = vmatprep.subr.mxu1 %v706_v3  ;;  %p692_p4 = pnand %p691_p3, %p685_p0 }
 0x166   :  { %v665_v37 = vpop.eup %664 }
 0x167   :  { %v667_v25 = vpop.eup %666 }
 0x168   :  { %433 = vmatprep.mubr.f32.mxu1 %v667_v25  ;;  %v209_v26 = vadd.f32 %v667_v25, %v665_v37 }
 0x169   :  { %434 = vmatmul.mubr.f32.vlgmr.msra.gmra.mxu1 %v665_v37 }
 0x16a   :  { %v669_v38 = vpop.eup %668  ;;  %210 = vadd.xlane.f32.xlu1 %v209_v26 }
 0x16b   :  { %v671_v39 = vpop.eup %670 }
 0x16c   :  { %438 = vmatprep.mubr.f32.mxu1 %v671_v39  ;;  %v212_v40 = vadd.f32 %v671_v39, %v669_v38 }
 0x16d   :  { %439 = vmatmul.mubr.f32.gmra.mxu1 %v669_v38 }
 0x16e   :  { %213 = vadd.xlane.f32.xlu0 %v212_v40  ;;  %647 = vmatprep.mubr.msk.f32.mxu1 %vm708_vm2, %v706_v3 }
 0x184   :  { %533 = vperm.xlu0 %654, %v530_v41  }
 0x1b7   :  { %v334_v42 = vpop.f32.mrf.mxu1 }
 0x1b8   :  { %v345_v51 = vmax.f32 %v334_v42, 1e-30 }
 0x1b9   :  { %v336_v43 = vpop.f32.mrf.mxu1 }
 0x1ba   :  { %v346_v50 = vmax.f32 %v336_v43, 1e-30 }
 0x1bb   :  { %v340_v44 = vpop.f32.mrf.mxu1 }
 0x1bc   :  { %v347_v49 = vmax.f32 %v340_v44, 1e-30 }
 0x1bd   :  { %v342_v46 = vpop.f32.mrf.mxu1 }
 0x1be   :  { %v348_v48 = vmax.f32 %v342_v46, 1e-30 }
 0x1f3   :  { %v211_v47 = vpop.xlane.xlu1 %210 }
 0x1f7   :  { %v214_v45 = vpop.xlane.xlu0 %213 }
 0x1f8   :  { %672 = vrcp.f32 %v214_v45 }
 0x1f9   :  { %674 = vrcp.f32 %v211_v47 }
 0x1fa   :  { %676 = vrcp.f32 %v348_v48 }
 0x1fb   :  { %678 = vrcp.f32 %v347_v49 }
 0x1fc   :  { %680 = vrcp.f32 %v346_v50 }
 0x1fd   :  { %682 = vrcp.f32 %v345_v51 }
 0x1ff   :  { %v534_v37 = vpop.permute.xlu0 %533 }
 0x205   :  { %v673_v52 = vpop.eup %672 }
 0x206   :  { %v675_v53 = vpop.eup %674  ;;  %v218_v54 = vmul.f32 %v673_v52, %v214_v45 }
 0x207   :  { %v677_v55 = vpop.eup %676  ;;  %v217_v56 = vmul.f32 %v675_v53, %v211_v47 }
 0x208   :  { %v220_v57 = vsub.f32 2.0, %v218_v54  ;;  %v679_v58 = vpop.eup %678  ;;  %v356_v59 = vmul.f32 %v677_v55, %v348_v48 }
 0x209   :  { %v681_v61 = vpop.eup %680  ;;  %v219_v62 = vsub.f32 2.0, %v217_v56  ;;  %v355_v4 = vmul.f32 %v679_v58, %v347_v49 }
 0x20a   :  { %v683_v63 = vpop.eup %682  ;;  %v222_v5 = vmul.f32 %v673_v52, %v220_v57  ;;  %v354_v6 = vmul.f32 %v681_v61, %v346_v50  ;;  %v360_v7 = vsub.f32 2.0, %v356_v59 }
 0x20b   :  { %v353_v14 = vmul.f32 %v683_v63, %v345_v51  ;;  %v221_v15 = vmul.f32 %v675_v53, %v219_v62  ;;  %v359_v20 = vsub.f32 2.0, %v355_v4 }
 0x20c   :  { %v358_v23 = vsub.f32 2.0, %v354_v6  ;;  %v364_v24 = vmul.f32 %v677_v55, %v360_v7 }
 0x20d   :  { %v357_v28 = vsub.f32 2.0, %v353_v14  ;;  %v363_v29 = vmul.f32 %v679_v58, %v359_v20 }
 0x20e   :  { %v362_v31 = vmul.f32 %v681_v61, %v358_v23  ;;  %v368_v32 = vmul.f32 %v827_v11, %v364_v24 }
 0x20f   :  { %v361_v33 = vmul.f32 %v683_v63, %v357_v28  ;;  %v367_v35 = vmul.f32 %v825_v10, %v363_v29 }
 0x210   :  { %v366_v18 = vmul.f32 %v823_v9, %v362_v31 }
 0x211   :  { %v365_v19 = vmul.f32 %v829_v12, %v361_v33 }
 0x229   :  { %v435_v60 = vpop.f32.mrf.mxu1 }
 0x22a   :  { %v444_v21 = vmul.f32 %v435_v60, %v221_v15 }
 0x22b   :  { %v437_v2 = vpop.f32.mrf.mxu1 }
 0x22c   :  { %v448_v30 = vmul.f32 %v446_v27, %v444_v21 }
 0x22d   :  { %v440_v8 = vpop.f32.mrf.mxu1 }
 0x22e   :  { %v445_v16 = vmul.f32 %v440_v8, %v222_v5 }
 0x22f   :  { %v442_v17 = vpop.f32.mrf.mxu1 }
 0x230   :  { %v449_v22 = vmul.f32 %v447_v13, %v445_v16 }
 0x232   :  { %644 = vmatpush3.xpose.msk.msra.mxu1 %vm261_vm1, %v449_v22 }
 0x233   :  { %645 = vmatprep.subr.mxu1 %v706_v3 }
 0x236   :  { %646 = vmatpush3.xpose.msk.msra.mxu1 %vm261_vm1, %v448_v30 }
 0x237   :  { %567 = vmatprep.subr.mxu1 %v368_v32 }
 0x239   :  { %648 = vmatmul.mubr.msk.f32.vlgmr.msra.gmra.mxu1 %vm261_vm1, %v450_v34 }
 0x23a   :  { %568 = vmatpush1.msra.mxu1 %v367_v35  ;;  %603 = vmatprep.mubr.f32.mxu1 %v706_v3 }
 0x23b   :  { %569 = vmatprep.subr.mxu1 %v366_v18 }
 0x23c   :  { %570 = vmatpush1.msra.mxu1 %v365_v19 }
 0x2f9   :  { %v526_v11 = vpop.f32.mrf.mxu1 }
 0x2fa   :  { %639 = vmatmul.mubr.msk.f32.vlgmr.msra.gmra.mxu1 %vm261_vm1, %v526_v11 }
 0x2fb   :  { %v649_v36 = vpop.f32.mrf.mxu1 }
 0x3ba   :  { %v605_v25 = vpop.f32.mrf.mxu1 }
 0x3bb   :  { %v606_v26 = vadd.f32 %v605_v25, %v534_v37 }
 0x3bc   :  { %v607_v38 = vpop.f32.mrf.mxu1 }
 0x3bd   :  { %v610_v10 = vadd.f32 %v606_v26, %v758_v1  ;;  %v608_v9 = vadd.f32 %v607_v38, %v534_v37 }
 0x3bf   :  { %612 = vst [vmem:[#allocation2] sm:$0xff] %v610_v10  ;;  %v611_v12 = vadd.f32 %v608_v9, %v753_v0 }
 0x3c1   :  { %613 = vst [vmem:[#allocation2 + $0x8] sm:$0xff] %v611_v12 }
 0x3c2   :  { %695 = shalt.err (!%p692_p4)
}
 0x3c3   :  { %623 = dma.vmem_to_hbm [thread:$0]  %s621_s6, 256, %s884_s7, [#allocation3]  }
 0x3c4   :  { %704 = dma.done.wait [#allocation3], 256  }
 0x3c5   :  { %705 = vsyncadd [#allocation3], 4294967040 }
 0x3c6   :  { %627 = vsyncpa [#allocation3], 1 }

</bundles_post_ra>
